<compile_context>
chip_gen: v6e
topology: v6e:2x2x1
jax: 0.10.0
libtpu: 0.0.40
codegen_flags: <defaults>
</compile_context>

<pallas_src>
import functools

import jax
import jax.numpy as jnp
from jax.experimental import pallas as pl
from jax.experimental.pallas import tpu as pltpu


def _focal_loss_kernel(x_ref, t_ref, a_ref, out_ref, *,
                       gamma, ignore_index, n_total):
    """One row-tile: emit (partial focal-loss sum, valid-token count)."""
    x = x_ref[...].astype(jnp.float32)      # (TM, C) logits (bf16 widened)
    t = t_ref[...].astype(jnp.int32)        # (TM, 1) targets (int16/int32)
    a_row = a_ref[...]                      # (1, C) f32 per-class alpha

    tm, c = x.shape

    # Ragged tail: logits are NOT padded in HBM, so the final tile may contain
    # undefined rows; mask by absolute row index (also masks ignore_index).
    rows = pl.program_id(0) * tm + jax.lax.broadcasted_iota(jnp.int32, (tm, 1), 0)
    valid = (t != ignore_index) & (rows < n_total)            # (TM, 1) bool
    t_safe = jnp.where(valid, t, 0)

    # Numerically-stable log-softmax pieces; the full (TM, C) logp matrix is
    # never materialized — only the one-hot-gathered z_t and lse are needed.
    m = jnp.max(x, axis=-1, keepdims=True)
    z = x - m
    lse = jnp.log(jnp.sum(jnp.exp(z), axis=-1, keepdims=True))

    # One one-hot, two gathers: target logit and alpha[target] (alpha gather
    # replaces the old pre-gathered (TM,1) input stream).
    cls = jax.lax.broadcasted_iota(jnp.int32, (tm, c), 1)
    onehot = cls == t_safe                                    # (TM, C) bool
    z_t = jnp.sum(jnp.where(onehot, z, 0.0), axis=-1, keepdims=True)
    a_t = jnp.sum(jnp.where(onehot, a_row, 0.0), axis=-1, keepdims=True)

    # Clamp: z_t - lse can round to a tiny positive value; keep log_pt <= 0 so
    # pt <= 1 and the focal base is never negative (NaN-safe for frac. gamma).
    log_pt = jnp.minimum(z_t - lse, 0.0)                      # (TM, 1)
    pt = jnp.exp(log_pt)

    # Specialized focal modulator: gamma==0 → 1; integral gamma → VPU
    # multiplies (integer_pow); fractional → jnp.power (EUP exp/log).
    g = float(gamma)
    base = jnp.maximum(1.0 - pt, 0.0)
    if g == 0.0:
        focal = jnp.float32(1.0)
    elif g == int(g) and g > 0:
        focal = jax.lax.integer_pow(base, int(g))
    else:
        focal = jnp.power(base, jnp.float32(g))

    # Select (not multiply) masks undefined tail rows → NaN/Inf safe.
    loss = jnp.where(valid, -a_t * focal * log_pt, 0.0)       # (TM, 1)

    # Packed (sum, count) SMEM output — one output block per grid step.
    out_ref[0, 0] = jnp.sum(loss)
    out_ref[0, 1] = jnp.sum(valid.astype(jnp.float32))


def masked_focal_loss(logits, targets, alpha=None, gamma=0.0,
                      ignore_index=-100, block_rows=None):
    """logits: (B, T, C); targets: (B, T) int. Returns scalar f32 mean focal loss."""
    b, t, c = logits.shape
    n = b * t
    x = logits.reshape(n, c)
    y = targets.reshape(n)

    if alpha is None:
        a_full = jnp.ones((c,), dtype=jnp.float32)
    else:
        a_full = jnp.asarray(alpha, dtype=jnp.float32).reshape(c)
    a2 = a_full.reshape(1, c)

    # Targets stream: int16 when class count / ignore_index fit → halves the
    # lane-padded (TM,1) VMEM tile and the sparse HBM→VMEM fill.
    if c <= 32767 and -32768 <= int(ignore_index) <= 32767:
        tgt_dtype = jnp.int16
    else:
        tgt_dtype = jnp.int32
    y2 = y.astype(tgt_dtype).reshape(n, 1)

    # --- tile sizing with PADDED VMEM footprints ------------------------------
    LANE = 128
    SUB = 32                      # sublane multiple safe for f32/bf16/int16/int8
    itemsize = jnp.dtype(logits.dtype).itemsize
    c_lanes = ((c + LANE - 1) // LANE) * LANE
    logits_row_bytes = c_lanes * itemsize                       # (TM,C) pads C→128 lanes
    tgt_row_bytes = LANE * jnp.dtype(tgt_dtype).itemsize        # (TM,1) pads to 128 lanes
    per_row_2buf = 2 * (logits_row_bytes + tgt_row_bytes)       # double-buffered inputs

    try:
        vmem_cap = int(pltpu.get_tpu_info().vmem_capacity_bytes)
    except Exception:                                           # conservative: v7x
        vmem_cap = 64 * 1024 * 1024

    # Working-set budget: 32 MiB on v7x (64 MiB VMEM), 64 MiB on v5e/v6e (128 MiB).
    budget = min(vmem_cap // 2, 64 << 20)

    if block_rows is None:
        block_rows = budget // max(1, per_row_2buf)
        block_rows = min(block_rows, 32768)
    block_rows = max(SUB, (int(block_rows) // SUB) * SUB)
    n_pad = ((n + SUB - 1) // SUB) * SUB
    block_rows = min(block_rows, n_pad)
    grid_n = pl.cdiv(n, block_rows)

    # Declared VMEM limit covers the padded double-buffered working set plus
    # the tiny alpha tile and headroom; never under-declared, capped well below
    # physical capacity on every generation.
    alpha_bytes = 2 * 8 * c_lanes * 4
    working = block_rows * per_row_2buf + alpha_bytes + (1 << 20)
    vmem_limit = int(min(max(working + (4 << 20), 16 << 20),
                         max(vmem_cap * 3 // 4, 32 << 20)))

    kernel = functools.partial(_focal_loss_kernel, gamma=float(gamma),
                               ignore_index=int(ignore_index), n_total=n)

    # Per-tile partial (sum, count): no shared accumulator → grid axis stays
    # "parallel" (megacore sharding on v7x); wrapper does the final reduction.
    parts = pl.pallas_call(
        kernel,
        grid_spec=pltpu.PrefetchScalarGridSpec(
            num_scalar_prefetch=0,
            grid=(grid_n,),
            in_specs=[
                pl.BlockSpec((block_rows, c), lambda i: (i, 0)),   # logits tile
                pl.BlockSpec((block_rows, 1), lambda i: (i, 0)),   # targets tile
                pl.BlockSpec((1, c), lambda i: (0, 0)),            # alpha row (constant)
            ],
            out_specs=pl.BlockSpec((1, 2), lambda i: (i, 0),
                                   memory_space=pltpu.MemorySpace.SMEM),
        ),
        out_shape=jax.ShapeDtypeStruct((grid_n, 2), jnp.float32),
        compiler_params=pltpu.CompilerParams(
            dimension_semantics=("parallel",),
            vmem_limit_bytes=vmem_limit,
        ),
    )(x, y2, a2)

    total = jnp.sum(parts[:, 0])
    # Per-tile counts are exact integers (<= 32768 < 2^24); sum them in int32
    # so very large batches keep an exact denominator.
    cnt = jnp.sum(parts[:, 1].astype(jnp.int32)).astype(jnp.float32)
    return jnp.where(cnt > 0, total / cnt, jnp.float32(0.0))


def _reference_loss(logits, targets, alpha, gamma, ignore_index):
    """Pure-JAX reference mirroring the hub FocalLoss (reduction='mean')."""
    _, _, c = logits.shape
    x = logits.reshape(-1, c).astype(jnp.float32)
    y = targets.reshape(-1)
    valid = y != ignore_index
    y_safe = jnp.where(valid, y, 0)
    logp = jax.nn.log_softmax(x, axis=-1)
    log_pt = jnp.take_along_axis(logp, y_safe[:, None], axis=1)[:, 0]
    a_t = alpha[y_safe]
    pt = jnp.exp(log_pt)
    loss = a_t * (1.0 - pt) ** gamma * (-log_pt)
    loss = jnp.where(valid, loss, 0.0)
    cnt = jnp.sum(valid.astype(jnp.float32))
    return jnp.where(cnt > 0, jnp.sum(loss) / cnt, 0.0)


if __name__ == "__main__":
    ignore_index = -100
    key = jax.random.PRNGKey(0)

    # Case 1: typical shapes, gamma=2 (integer_pow path), per-class alpha.
    B, T, C = 2, 64, 32
    k1, k2, k3, k4 = jax.random.split(key, 4)
    logits = jax.random.normal(k1, (B, T, C), dtype=jnp.float32)
    targets = jax.random.randint(k2, (B, T), 0, C, dtype=jnp.int32)
    drop = jax.random.uniform(k3, (B, T)) < 0.2           # ~20% padding tokens
    targets = jnp.where(drop, ignore_index, targets)
    alpha = jnp.linspace(0.25, 1.0, C, dtype=jnp.float32)

    out = masked_focal_loss(logits, targets, alpha=alpha, gamma=2.0,
                            ignore_index=ignore_index)
    out = jax.block_until_ready(out)
    ref = _reference_loss(logits, targets, alpha, 2.0, ignore_index)
    assert jnp.allclose(out, ref, rtol=1e-5, atol=1e-6), (out, ref)

    # Case 2: ragged row count (N=111), small forced tile so the grid has a
    # partial last block; alpha=None, fractional gamma (jnp.power path).
    B2, T2, C2 = 3, 37, 48
    k5, k6, k7 = jax.random.split(k4, 3)
    logits2 = jax.random.normal(k5, (B2, T2, C2), dtype=jnp.float32)
    targets2 = jax.random.randint(k6, (B2, T2), 0, C2, dtype=jnp.int32)
    targets2 = jnp.where(jax.random.uniform(k7, (B2, T2)) < 0.3,
                         ignore_index, targets2)
    out2 = masked_focal_loss(logits2, targets2, alpha=None, gamma=1.5,
                             ignore_index=ignore_index, block_rows=32)
    out2 = jax.block_until_ready(out2)
    ref2 = _reference_loss(logits2, targets2, jnp.ones((C2,), jnp.float32),
                           1.5, ignore_index)
    assert jnp.allclose(out2, ref2, rtol=1e-5, atol=1e-6), (out2, ref2)

    # Case 3: gamma=0 (masked cross-entropy special case).
    out3 = masked_focal_loss(logits, targets, alpha=alpha, gamma=0.0,
                             ignore_index=ignore_index)
    out3 = jax.block_until_ready(out3)
    ref3 = _reference_loss(logits, targets, alpha, 0.0, ignore_index)
    assert jnp.allclose(out3, ref3, rtol=1e-5, atol=1e-6), (out3, ref3)

    # Case 4: bf16 logits producer (kernel widens to f32 internally).
    logits_bf16 = logits.astype(jnp.bfloat16)
    out4 = masked_focal_loss(logits_bf16, targets, alpha=alpha, gamma=2.0,
                             ignore_index=ignore_index)
    out4 = jax.block_until_ready(out4)
    ref4 = _reference_loss(logits_bf16.astype(jnp.float32), targets, alpha,
                           2.0, ignore_index)
    assert jnp.allclose(out4, ref4, rtol=1e-5, atol=1e-5), (out4, ref4)

    print("KERNEL_OK")
</pallas_src>

<mosaic_0001>
module attributes {stable_mosaic.version = 11 : i64} {
  func.func @_focal_loss_kernel(%arg0: i32, %arg1: memref<128x32xf32, #tpu.memory_space<vmem>>, %arg2: memref<128x1xi16, #tpu.memory_space<vmem>>, %arg3: memref<1x32xf32, #tpu.memory_space<vmem>>, %arg4: memref<1x2xf32, #tpu.memory_space<smem>>) attributes {dimension_semantics = [#tpu.dimension_semantics<parallel>], iteration_bounds = array<i64: 1>, scalar_prefetch = 0 : i64, scratch_operands = 0 : i64, tpu.core_type = #tpu.core_type<tc>, window_params = [{transform_indices = @transform_0, window_bounds = array<i64: 128, 32>}, {transform_indices = @transform_1, window_bounds = array<i64: 128, 1>}, {pipeline_mode = #tpu.pipeline_mode<synchronous>, transform_indices = @transform_2, window_bounds = array<i64: 1, 32>}, {transform_indices = @transform_3, window_bounds = array<i64: 1, 2>}]} {
    %c0 = arith.constant 0 : index
    %c0_0 = arith.constant 0 : index
    %0 = vector.load %arg1[%c0, %c0_0] : memref<128x32xf32, #tpu.memory_space<vmem>>, vector<128x32xf32>
    %c0_1 = arith.constant 0 : index
    %c0_2 = arith.constant 0 : index
    %1 = vector.load %arg2[%c0_1, %c0_2] : memref<128x1xi16, #tpu.memory_space<vmem>>, vector<128x1xi16>
    %2 = arith.extsi %1 : vector<128x1xi16> to vector<128x1xi32>
    %c0_3 = arith.constant 0 : index
    %c0_4 = arith.constant 0 : index
    %3 = vector.load %arg3[%c0_3, %c0_4] : memref<1x32xf32, #tpu.memory_space<vmem>>, vector<1x32xf32>
    %c128_i32 = arith.constant 128 : i32
    %4 = arith.muli %arg0, %c128_i32 : i32
    %5 = tpu.iota {dimensions = array<i32: 0>} : vector<128x1xi32>
    %6 = vector.broadcast %4 : i32 to vector<128x1xi32>
    %7 = arith.addi %6, %5 : vector<128x1xi32>
    %c-100_i32 = arith.constant -100 : i32
    %8 = vector.broadcast %c-100_i32 : i32 to vector<128x1xi32>
    %9 = arith.cmpi ne, %2, %8 : vector<128x1xi32>
    %c128_i32_5 = arith.constant 128 : i32
    %10 = vector.broadcast %c128_i32_5 : i32 to vector<128x1xi32>
    %11 = arith.cmpi slt, %7, %10 : vector<128x1xi32>
    %12 = arith.andi %9, %11 : vector<128x1xi1>
    %c0_i32 = arith.constant 0 : i32
    %13 = vector.broadcast %c0_i32 : i32 to vector<128x1xi32>
    %14 = arith.select %12, %2, %13 : vector<128x1xi1>, vector<128x1xi32>
    %cst = arith.constant dense<0xFF800000> : vector<128xf32>
    %15 = vector.multi_reduction <maximumf>, %0, %cst [1] : vector<128x32xf32> to vector<128xf32>
    %16 = vector.shape_cast %15 : vector<128xf32> to vector<128x1xf32>
    %17 = vector.broadcast %16 : vector<128x1xf32> to vector<128x32xf32>
    %18 = arith.subf %0, %17 : vector<128x32xf32>
    %19 = math.exp %18 : vector<128x32xf32>
    %cst_6 = arith.constant dense<0.000000e+00> : vector<128xf32>
    %20 = vector.multi_reduction <add>, %19, %cst_6 [1] : vector<128x32xf32> to vector<128xf32>
    %21 = vector.shape_cast %20 : vector<128xf32> to vector<128x1xf32>
    %22 = math.log %21 : vector<128x1xf32>
    %23 = tpu.iota {dimensions = array<i32: 1>} : vector<128x32xi32>
    %24 = vector.broadcast %14 : vector<128x1xi32> to vector<128x32xi32>
    %25 = arith.cmpi eq, %23, %24 : vector<128x32xi32>
    %cst_7 = arith.constant 0.000000e+00 : f32
    %26 = vector.broadcast %cst_7 : f32 to vector<128x32xf32>
    %27 = arith.select %25, %18, %26 : vector<128x32xi1>, vector<128x32xf32>
    %cst_8 = arith.constant dense<0.000000e+00> : vector<128xf32>
    %28 = vector.multi_reduction <add>, %27, %cst_8 [1] : vector<128x32xf32> to vector<128xf32>
    %29 = vector.shape_cast %28 : vector<128xf32> to vector<128x1xf32>
    %cst_9 = arith.constant 0.000000e+00 : f32
    %30 = vector.shape_cast %3 : vector<1x32xf32> to vector<1x32xf32>
    %31 = vector.broadcast %30 : vector<1x32xf32> to vector<128x32xf32>
    %32 = vector.broadcast %cst_9 : f32 to vector<128x32xf32>
    %33 = arith.select %25, %31, %32 : vector<128x32xi1>, vector<128x32xf32>
    %cst_10 = arith.constant dense<0.000000e+00> : vector<128xf32>
    %34 = vector.multi_reduction <add>, %33, %cst_10 [1] : vector<128x32xf32> to vector<128xf32>
    %35 = vector.shape_cast %34 : vector<128xf32> to vector<128x1xf32>
    %36 = arith.subf %29, %22 : vector<128x1xf32>
    %cst_11 = arith.constant 0.000000e+00 : f32
    %37 = vector.broadcast %cst_11 : f32 to vector<128x1xf32>
    %38 = arith.minimumf %36, %37 : vector<128x1xf32>
    %39 = math.exp %38 : vector<128x1xf32>
    %cst_12 = arith.constant 1.000000e+00 : f32
    %40 = vector.broadcast %cst_12 : f32 to vector<128x1xf32>
    %41 = arith.subf %40, %39 : vector<128x1xf32>
    %cst_13 = arith.constant 0.000000e+00 : f32
    %42 = vector.broadcast %cst_13 : f32 to vector<128x1xf32>
    %43 = arith.maximumf %41, %42 : vector<128x1xf32>
    %44 = arith.mulf %43, %43 : vector<128x1xf32>
    %cst_14 = arith.constant 0.000000e+00 : f32
    %45 = vector.broadcast %cst_14 : f32 to vector<128x1xf32>
    %46 = arith.subf %45, %35 : vector<128x1xf32>
    %47 = arith.mulf %46, %44 : vector<128x1xf32>
    %48 = arith.mulf %47, %38 : vector<128x1xf32>
    %cst_15 = arith.constant 0.000000e+00 : f32
    %49 = vector.broadcast %cst_15 : f32 to vector<128x1xf32>
    %50 = arith.select %12, %48, %49 : vector<128x1xi1>, vector<128x1xf32>
    %51 = vector.shape_cast %50 : vector<128x1xf32> to vector<1x128x1xf32>
    %cst_16 = arith.constant dense<0.000000e+00> : vector<1xf32>
    %52 = vector.multi_reduction <add>, %51, %cst_16 [1, 2] : vector<1x128x1xf32> to vector<1xf32>
    %53 = vector.shape_cast %52 : vector<1xf32> to vector<1x1x1xf32>
    %54 = vector.extract %53[0, 0, 0] : f32 from vector<1x1x1xf32>
    %c0_17 = arith.constant 0 : index
    %c0_18 = arith.constant 0 : index
    %55 = memref.load %arg4[%c0_17, %c0_18] : memref<1x2xf32, #tpu.memory_space<smem>>
    memref.store %54, %arg4[%c0_17, %c0_18] : memref<1x2xf32, #tpu.memory_space<smem>>
    %56 = arith.extui %12 : vector<128x1xi1> to vector<128x1xi32>
    %57 = arith.sitofp %56 : vector<128x1xi32> to vector<128x1xf32>
    %58 = vector.shape_cast %57 : vector<128x1xf32> to vector<1x128x1xf32>
    %cst_19 = arith.constant dense<0.000000e+00> : vector<1xf32>
    %59 = vector.multi_reduction <add>, %58, %cst_19 [1, 2] : vector<1x128x1xf32> to vector<1xf32>
    %60 = vector.shape_cast %59 : vector<1xf32> to vector<1x1x1xf32>
    %61 = vector.extract %60[0, 0, 0] : f32 from vector<1x1x1xf32>
    %c0_20 = arith.constant 0 : index
    %c1 = arith.constant 1 : index
    %62 = memref.load %arg4[%c0_20, %c1] : memref<1x2xf32, #tpu.memory_space<smem>>
    memref.store %61, %arg4[%c0_20, %c1] : memref<1x2xf32, #tpu.memory_space<smem>>
    return
  }
  func.func @transform_0(%arg0: i32) -> (i32, i32) {
    %c0_i32 = arith.constant 0 : i32
    %c0_i32_0 = arith.constant 0 : i32
    return %arg0, %c0_i32 : i32, i32
  }
  func.func @transform_1(%arg0: i32) -> (i32, i32) {
    %c0_i32 = arith.constant 0 : i32
    %c0_i32_0 = arith.constant 0 : i32
    return %arg0, %c0_i32 : i32, i32
  }
  func.func @transform_2(%arg0: i32) -> (i32, i32) {
    %c0_i32 = arith.constant 0 : i32
    %c0_i32_0 = arith.constant 0 : i32
    %c0_i32_1 = arith.constant 0 : i32
    return %c0_i32, %c0_i32_0 : i32, i32
  }
  func.func @transform_3(%arg0: i32) -> (i32, i32) {
    %c0_i32 = arith.constant 0 : i32
    %c0_i32_0 = arith.constant 0 : i32
    return %arg0, %c0_i32 : i32, i32
  }
}

</mosaic_0001>

<bundles_post_ra>
// kernel: tpu_custom_call.1
= control target key start
LH: loop header
LB: loop body
LE: loop exit
PB: predicated region body
PF: predicated region fallthrough
CT: control target
= control target key end

     0   :  { %vm1757_vm0 = vcmask 261120   ;;  %v1017_v6 = vmov 0   ;;  %s1753_s0 = inlined_call_operand.vmem [shape: f32[128,32], index: 0, kind: input, shape index: {}]   ;;  %s1754_s1 = inlined_call_operand.vmem [shape: s16[128,1], index: 1, kind: input, shape index: {}]   ;;  %s1755_s2 = inlined_call_operand.vmem [shape: f32[1,32], index: 2, kind: input, shape index: {}]   ;;  %s1756_s3 = inlined_call_operand.hbm [shape: f32[1,2], index: 3, kind: output, shape index: {}]  }
   0x1   :  { %v1043_v0 = vld [vmem:[%s1753_s0 + $0x10] sm:$0xff]  ;;  %v1048_v1 = vld [vmem:[%s1753_s0] sm:$0xff]  ;;  %v1053_v2 = vld [vmem:[%s1753_s0 + $0x18] sm:$0xff]  ;;  %910 = vset.pattern.permute.xlu1 %v1017_v6  ;;  %909 = vset.pattern.permute.xlu0 %v1017_v6 }
   0x2   :  { %v170_v3 = vsel %vm1757_vm0, %v1043_v0, -inf  ;;  %v164_v4 = vsel %vm1757_vm0, %v1048_v1, -inf  ;;  %v1062_v5 = vld [vmem:[%s1753_s0 + $0x8] sm:$0xff]  ;;  %v173_v7 = vsel %vm1757_vm0, %v1053_v2, -inf  ;;  %v1076_v10 = vld [vmem:[%s1753_s0 + $0x20] sm:$0xff]  ;;  %v1085_v13 = vld [vmem:[%s1753_s0 + $0x38] sm:$0xff] }
   0x3   :  { %171 = vmax.xlane.f32.xlu1 %v170_v3  ;;  %165 = vmax.xlane.f32.xlu0 %v164_v4  ;;  %v167_v8 = vsel %vm1757_vm0, %v1062_v5, -inf  ;;  %v1071_v9 = vld [vmem:[%s1753_s0 + $0x28] sm:$0xff]  ;;  %v176_v12 = vsel %vm1757_vm0, %v1076_v10, -inf  ;;  %v1090_v14 = vld [vmem:[%s1753_s0 + $0x30] sm:$0xff] }
   0x4   :  { %v179_v11 = vsel %vm1757_vm0, %v1071_v9, -inf }
   0x7   :  { %174 = vmax.xlane.f32.xlu1 %v173_v7  ;;  %168 = vmax.xlane.f32.xlu0 %v167_v8 }
   0x8   :  { %8 = vsyncpa [#allocation3], 0  ;;  %v185_v15 = vsel %vm1757_vm0, %v1085_v13, -inf  ;;  %v182_v16 = vsel %vm1757_vm0, %v1090_v14, -inf  ;;  %v1099_v17 = vld [vmem:[%s1753_s0 + $0x48] sm:$0xff]  ;;  %v1104_v18 = vld [vmem:[%s1753_s0 + $0x40] sm:$0xff] }
   0x9   :  { %v191_v19 = vsel %vm1757_vm0, %v1099_v17, -inf  ;;  %v188_v20 = vsel %vm1757_vm0, %v1104_v18, -inf  ;;  %v1113_v21 = vld [vmem:[%s1753_s0 + $0x58] sm:$0xff]  ;;  %v1118_v22 = vld [vmem:[%s1753_s0 + $0x50] sm:$0xff]  ;;  %v1127_v25 = vld [vmem:[%s1753_s0 + $0x68] sm:$0xff]  ;;  %v1797_v58 = vmov 0 }
   0xa   :  { %v197_v23 = vsel %vm1757_vm0, %v1113_v21, -inf  ;;  %v194_v24 = vsel %vm1757_vm0, %v1118_v22, -inf  ;;  %v1132_v26 = vld [vmem:[%s1753_s0 + $0x60] sm:$0xff]  ;;  %v203_v27 = vsel %vm1757_vm0, %v1127_v25, -inf  ;;  %v1141_v29 = vld [vmem:[%s1753_s0 + $0x78] sm:$0xff]  ;;  %v1146_v30 = vld [vmem:[%s1753_s0 + $0x70] sm:$0xff] }
   0xb   :  { %180 = vmax.xlane.f32.xlu1 %v179_v11  ;;  %177 = vmax.xlane.f32.xlu0 %v176_v12  ;;  %v200_v28 = vsel %vm1757_vm0, %v1132_v26, -inf  ;;  %v209_v31 = vsel %vm1757_vm0, %v1141_v29, -inf  ;;  %v206_v32 = vsel %vm1757_vm0, %v1146_v30, -inf  ;;  %v864_v33 = vld [vmem:[%s1754_s1] sm:$0xff]   ;;  %v895_v35 = vld [vmem:[%s1754_s1 + $0x8] sm:$0xff]   ;;  %v896_v45 = vld [vmem:[%s1754_s1 + $0x10] sm:$0xff]  }
   0xc   :  { %v866_v34 = vunpack.c.h.b16 %v864_v33  ;;  %v869_v37 = vunpack.c.l.b16 %v895_v35  ;;  %v865_v38 = vunpack.c.l.b16 %v864_v33  ;;  %v898_v39 = vld [vmem:[%s1754_s1 + $0x20] sm:$0xff]   ;;  %v870_v42 = vunpack.c.h.b16 %v895_v35  ;;  %v899_v46 = vld [vmem:[%s1754_s1 + $0x28] sm:$0xff]   ;;  %v900_v53 = vld [vmem:[%s1754_s1 + $0x30] sm:$0xff]   ;;  %s1019_s7 = smov [#allocation2]  }
   0xd   :  { %v882_v44 = vunpack.c.h.b16 %v898_v39  ;;  %v873_v50 = vunpack.c.l.b16 %v896_v45  ;;  %v886_v52 = vunpack.c.h.b16 %v899_v46  ;;  %v874_v57 = vunpack.c.h.b16 %v896_v45  ;;  %v897_v60 = vld [vmem:[%s1754_s1 + $0x18] sm:$0xff]  }
   0xe   :  { %vm1158_vm1 = vcmp.ne.s32.totalorder %v866_v34, 4294967196  ;;  %vm1167_vm2 = vcmp.ne.s32.totalorder %v869_v37, 4294967196  ;;  %vm1171_vm3 = vcmp.ne.s32.totalorder %v865_v38, 4294967196  ;;  %vm1185_vm4 = vcmp.ne.s32.totalorder %v870_v42, 4294967196  ;;  %v901_v61 = vld [vmem:[%s1754_s1 + $0x38] sm:$0xff]  }
   0xf   :  { %186 = vmax.xlane.f32.xlu1 %v185_v15  ;;  %183 = vmax.xlane.f32.xlu0 %v182_v16  ;;  %v148_v40 = vsel %vm1158_vm1, %v866_v34, 0  ;;  %v149_v47 = vsel %vm1167_vm2, %v869_v37, 0  ;;  %v147_v48 = vsel %vm1171_vm3, %v865_v38, 0  ;;  %vm1189_vm5 = vcmp.ne.s32.totalorder %v882_v44, 4294967196 }
  0x10   :  { %v150_v54 = vsel %vm1185_vm4, %v870_v42, 0  ;;  %v156_v55 = vsel %vm1189_vm5, %v882_v44, 0  ;;  %vm1200_vm6 = vcmp.ne.s32.totalorder %v873_v50, 4294967196  ;;  %vm1204_vm7 = vcmp.ne.s32.totalorder %v886_v52, 4294967196 }
  0x11   :  { %v1798_v58 = vsel %vm1204_vm7, 4294967295, %v1797_v58  ;;  %v890_v59 = vunpack.c.h.b16 %v900_v53  ;;  %v151_v62 = vsel %vm1200_vm6, %v873_v50, 0  ;;  %v158_v63 = vsel %vm1204_vm7, %v886_v52, 0 }
  0x12   :  { %vm1218_vm8 = vcmp.ne.s32.totalorder %v874_v57, 4294967196  ;;  %v877_v4 = vunpack.c.l.b16 %v897_v60  ;;  %v1801_v6 = vmov 0  ;;  %v894_v7 = vunpack.c.h.b16 %v901_v61 }
  0x13   :  { %192 = vmax.xlane.f32.xlu1 %v191_v19  ;;  %189 = vmax.xlane.f32.xlu0 %v188_v20  ;;  %vm1222_vm9 = vcmp.ne.s32.totalorder %v890_v59, 4294967196  ;;  %v152_v8 = vsel %vm1218_vm8, %v874_v57, 0  ;;  %v878_v15 = vunpack.c.h.b16 %v897_v60  ;;  %v1805_v16 = vmov 0 }
  0x14   :  { %v1802_v6 = vsel %vm1222_vm9, 4294967295, %v1801_v6  ;;  %v160_v11 = vsel %vm1222_vm9, %v890_v59, 0  ;;  %vm1230_vm10 = vcmp.ne.s32.totalorder %v877_v4, 4294967196  ;;  %vm1234_vm11 = vcmp.ne.s32.totalorder %v894_v7, 4294967196 }
  0x15   :  { %v1806_v16 = vsel %vm1234_vm11, 4294967295, %v1805_v16  ;;  %v153_v19 = vsel %vm1230_vm10, %v877_v4, 0  ;;  %v162_v20 = vsel %vm1234_vm11, %v894_v7, 0  ;;  %vm1242_vm12 = vcmp.ne.s32.totalorder %v878_v15, 4294967196 }
  0x16   :  { %v1811_v33 = vmov 0  ;;  %v889_v34 = vunpack.c.l.b16 %v900_v53  ;;  %v1813_v37 = vmov 0  ;;  %v893_v38 = vunpack.c.l.b16 %v901_v61 }
  0x17   :  { %198 = vmax.xlane.f32.xlu1 %v197_v23  ;;  %195 = vmax.xlane.f32.xlu0 %v194_v24  ;;  %v881_v24 = vunpack.c.l.b16 %v898_v39  ;;  %v340_v4 = vlaneseq }
  0x18   :  { %vm1260_vm15 = vcmp.ne.s32.totalorder %v889_v34, 4294967196  ;;  %vm1266_vm0 = vcmp.ne.s32.totalorder %v893_v38, 4294967196 }
  0x19   :  { %vm1248_vm13 = vcmp.ne.s32.totalorder %v881_v24, 4294967196  ;;  %v1814_v37 = vsel %vm1260_vm15, 4294967295, %v1813_v37  ;;  %v159_v39 = vsel %vm1260_vm15, %v889_v34, 0  ;;  %v161_v42 = vsel %vm1266_vm0, %v893_v38, 0 }
  0x1b   :  { %204 = vmax.xlane.f32.xlu1 %v203_v27  ;;  %201 = vmax.xlane.f32.xlu0 %v200_v28  ;;  %v154_v27 = vsel %vm1242_vm12, %v878_v15, 0 }
  0x1f   :  { %210 = vmax.xlane.f32.xlu1 %v209_v31  ;;  %207 = vmax.xlane.f32.xlu0 %v206_v32  ;;  %v885_v31 = vunpack.c.l.b16 %v899_v46  ;;  %v155_v32 = vsel %vm1248_vm13, %v881_v24, 0 }
  0x21   :  { %vm1254_vm14 = vcmp.ne.s32.totalorder %v885_v31, 4294967196 }
  0x22   :  { %v1812_v33 = vsel %vm1254_vm14, 4294967295, %v1811_v33  ;;  %v157_v35 = vsel %vm1254_vm14, %v885_v31, 0 }
  0x30   :  { %346 = vperm.xlu1 %910, %v148_v40   ;;  %v1815_v40 = vmov 0 }
  0x31   :  { %v1816_v40 = vsel %vm1266_vm0, 4294967295, %v1815_v40  ;;  %vm1817_vm0 = vcmask 261120  }
  0x32   :  { %vm1831_vm14 = vmmov %vm1817_vm0 }
  0x34   :  { %349 = vperm.xlu1 %910, %v149_v47  }
  0x35   :  { %343 = vperm.xlu0 %909, %v147_v48  }
  0x38   :  { %352 = vperm.xlu1 %910, %v150_v54  }
  0x39   :  { %370 = vperm.xlu0 %909, %v156_v55  }
  0x3c   :  { %355 = vperm.xlu1 %910, %v151_v62  }
  0x3d   :  { %376 = vperm.xlu0 %909, %v158_v63  }
  0x40   :  { %358 = vperm.xlu1 %910, %v152_v8  }
  0x41   :  { %382 = vperm.xlu0 %909, %v160_v11  }
  0x44   :  { %361 = vperm.xlu1 %910, %v153_v19  }
  0x45   :  { %388 = vperm.xlu0 %909, %v162_v20   ;;  %v1282_v20 = vand.u32 127, %v340_v4 }
  0x48   :  { %364 = vperm.xlu1 %910, %v154_v27  }
  0x4c   :  { %367 = vperm.xlu1 %910, %v155_v32  }
  0x50   :  { %373 = vperm.xlu1 %910, %v157_v35  }
  0x54   :  { %379 = vperm.xlu1 %910, %v159_v39  }
  0x58   :  { %385 = vperm.xlu1 %910, %v161_v42  }
  0x8c   :  { %v172_v44 = vpop.xlane.xlu1 %171  ;;  %v166_v45 = vpop.xlane.xlu0 %165 }
  0x8d   :  { %v214_v61 = vsub.f32 %v1043_v0, %v172_v44  ;;  %v212_v19 = vsub.f32 %v1048_v1, %v166_v45 }
  0x8f   :  { %v232_v8 = vmul.f32 1.442695, %v214_v61  ;;  %v228_v31 = vmul.f32 1.442695, %v212_v19 }
  0x90   :  { %v175_v46 = vpop.xlane.xlu1 %174  ;;  %v169_v47 = vpop.xlane.xlu0 %168 }
  0x91   :  { %v213_v57 = vsub.f32 %v1062_v5, %v169_v47  ;;  %v215_v32 = vsub.f32 %v1053_v2, %v175_v46 }
  0x93   :  { %v230_v62 = vmul.f32 1.442695, %v213_v57  ;;  %v234_v2 = vmul.f32 1.442695, %v215_v32 }
  0x94   :  { %v181_v48 = vpop.xlane.xlu1 %180  ;;  %v178_v50 = vpop.xlane.xlu0 %177 }
  0x95   :  { %911 = vpow2.f32 %v230_v62  ;;  %v216_v11 = vsub.f32 %v1076_v10, %v178_v50  ;;  %v217_v39 = vsub.f32 %v1071_v9, %v181_v48 }
  0x96   :  { %913 = vpow2.f32 %v232_v8 }
  0x97   :  { %v236_v0 = vmul.f32 1.442695, %v216_v11 }
  0x98   :  { %v187_v52 = vpop.xlane.xlu1 %186  ;;  %v184_v53 = vpop.xlane.xlu0 %183 }
  0x99   :  { %v1285_v5 = vsub.f32 %v1090_v14, %v184_v53  ;;  %915 = vpow2.f32 %v236_v0  ;;  %v1326_v48 = vsub.f32 %v1085_v13, %v187_v52  ;;  %v238_v53 = vmul.f32 1.442695, %v217_v39 }
  0x9a   :  { %917 = vpow2.f32 %v228_v31 }
  0x9b   :  { %v240_v10 = vmul.f32 1.442695, %v1285_v5  ;;  %v242_v62 = vmul.f32 1.442695, %v1326_v48 }
  0x9c   :  { %v1272_v54 = vpop.xlane.xlu1 %192  ;;  %v190_v55 = vpop.xlane.xlu0 %189 }
  0x9d   :  { %v1299_v14 = vsub.f32 %v1104_v18, %v190_v55  ;;  %919 = vpow2.f32 %v240_v10 }
  0x9e   :  { %921 = vpow2.f32 %v234_v2 }
  0x9f   :  { %v244_v44 = vmul.f32 1.442695, %v1299_v14 }
  0xa0   :  { %v199_v59 = vpop.xlane.xlu1 %198  ;;  %v196_v60 = vpop.xlane.xlu0 %195 }
  0xa1   :  { %v1319_v45 = vsub.f32 %v1118_v22, %v196_v60  ;;  %v1331_v22 = vsub.f32 %v1113_v21, %v199_v59  ;;  %923 = vpow2.f32 %v244_v44  ;;  %v1346_v21 = vsub.f32 %v1099_v17, %v1272_v54 }
  0xa2   :  { %v912_v50 = vpop.eup %911  ;;  %925 = vpow2.f32 %v238_v53 }
  0xa3   :  { %v263_v13 = vsel %vm1817_vm0, %v912_v50, 0.0  ;;  %v914_v52 = vpop.eup %913  ;;  %v250_v59 = vmul.f32 1.442695, %v1331_v22  ;;  %v246_v54 = vmul.f32 1.442695, %v1346_v21 }
  0xa4   :  { %v1276_v63 = vpop.xlane.xlu1 %204  ;;  %v202_v7 = vpop.xlane.xlu0 %201  ;;  %v266_v0 = vsel %vm1817_vm0, %v914_v52, 0.0 }
  0xa5   :  { %v1353_v8 = vsub.f32 %v1132_v26, %v202_v7 }
  0xa6   :  { %v916_v31 = vpop.eup %915 }
  0xa7   :  { %v918_v17 = vpop.eup %917  ;;  %v252_v10 = vmul.f32 1.442695, %v1353_v8 }
  0xa8   :  { %v1279_v15 = vpop.xlane.xlu1 %210  ;;  %v1287_v24 = vpop.xlane.xlu0 %207 }
  0xaa   :  { %v920_v7 = vpop.eup %919 }
  0xac   :  { %v1289_v27 = vpop.permute.xlu1 %346 }
  0xad   :  { %vm1766_vm11 = vcmp.eq.s32.totalorder %v1282_v20, %v1289_v27 }
  0xae   :  { %v407_v1 = vsel %vm1766_vm11, %v213_v57, 0.0  ;;  %vm1818_vm11 = vmmov %vm1817_vm0  ;;  %v248_v57 = vmul.f32 1.442695, %v1319_v45 }
  0xaf   :  { %v425_v34 = vsel %vm1817_vm0, %v407_v1, 0.0 }
  0xb0   :  { %v1302_v35 = vpop.permute.xlu1 %349  ;;  %426 = vadd.xlane.f32.xlu1 %v425_v34  ;;  %v1304_v38 = vpop.permute.xlu0 %343  ;;  %927 = vpow2.f32 %v248_v57  ;;  %v272_v34 = vsel %vm1817_vm0, %v916_v31, 0.0 }
  0xb1   :  { %vm1767_vm9 = vcmp.eq.s32.totalorder %v1282_v20, %v1302_v35  ;;  %vm1768_vm15 = vcmp.eq.s32.totalorder %v1282_v20, %v1304_v38  ;;  %929 = vpow2.f32 %v242_v62 }
  0xb2   :  { %v408_v18 = vsel %vm1767_vm9, %v214_v61, 0.0  ;;  %v406_v42 = vsel %vm1768_vm15, %v212_v19, 0.0  ;;  %931 = vpow2.f32 %v250_v59 }
  0xb3   :  { %v428_v46 = vsel %vm1817_vm0, %v408_v18, 0.0  ;;  %v422_v47 = vsel %vm1818_vm11, %v406_v42, 0.0  ;;  %vm1819_vm11 = vmmov %vm1817_vm0  ;;  %933 = vpow2.f32 %v246_v54  ;;  %v922_v18 = vpop.eup %921 }
  0xb4   :  { %v1323_v9 = vpop.permute.xlu1 %352  ;;  %429 = vadd.xlane.f32.xlu1 %v428_v46  ;;  %423 = vadd.xlane.f32.xlu0 %v422_v47  ;;  %935 = vpow2.f32 %v252_v10  ;;  %v1382_v47 = vsub.f32 %v1141_v29, %v1279_v15 }
  0xb5   :  { %vm1769_vm9 = vcmp.eq.s32.totalorder %v1282_v20, %v1323_v9 }
  0xb6   :  { %v409_v55 = vsel %vm1769_vm9, %v215_v32, 0.0 }
  0xb7   :  { %v431_v60 = vsel %vm1819_vm11, %v409_v55, 0.0  ;;  %vm1820_vm11 = vmmov %vm1817_vm0 }
  0xb8   :  { %v1339_v61 = vpop.permute.xlu1 %355  ;;  %432 = vadd.xlane.f32.xlu1 %v431_v60  ;;  %264 = vadd.xlane.f32.xlu0 %v263_v13  ;;  %v258_v60 = vmul.f32 1.442695, %v1382_v47 }
  0xb9   :  { %vm1770_vm15 = vcmp.eq.s32.totalorder %v1282_v20, %v1339_v61 }
  0xba   :  { %v410_v4 = vsel %vm1770_vm15, %v216_v11, 0.0  ;;  %v1367_v11 = vsub.f32 %v1127_v25, %v1276_v63  ;;  %vm1822_vm15 = vmmov %vm1817_vm0  ;;  %v924_v63 = vpop.eup %923 }
  0xbb   :  { %v434_v19 = vsel %vm1820_vm11, %v410_v4, 0.0  ;;  %vm1821_vm11 = vmmov %vm1817_vm0  ;;  %v260_v2 = vsel %vm1822_vm15, %v918_v17, 0.0  ;;  %v926_v46 = vpop.eup %925 }
  0xbc   :  { %v1357_v32 = vpop.permute.xlu1 %358  ;;  %435 = vadd.xlane.f32.xlu1 %v434_v19  ;;  %267 = vadd.xlane.f32.xlu0 %v266_v0  ;;  %v254_v42 = vmul.f32 1.442695, %v1367_v11  ;;  %vm1825_vm15 = vmmov %vm1817_vm0  ;;  %v1397_v19 = vpop.permute.xlu0 %370 }
  0xbd   :  { %vm1771_vm9 = vcmp.eq.s32.totalorder %v1282_v20, %v1357_v32  ;;  %v284_v53 = vsel %vm1825_vm15, %v924_v63, 0.0  ;;  %v928_v55 = vpop.eup %927  ;;  %vm1828_vm15 = vmmov %vm1817_vm0 }
  0xbe   :  { %v411_v26 = vsel %vm1771_vm9, %v217_v39, 0.0  ;;  %v1376_v39 = vsub.f32 %v1146_v30, %v1287_v24  ;;  %vm1823_vm9 = vmmov %vm1817_vm0  ;;  %937 = vpow2.f32 %v254_v42  ;;  %v930_v30 = vpop.eup %929  ;;  %v290_v52 = vsel %vm1817_vm0, %v928_v55, 0.0 }
  0xbf   :  { %v437_v1 = vsel %vm1821_vm11, %v411_v26, 0.0  ;;  %v278_v25 = vsel %vm1823_vm9, %v920_v7, 0.0  ;;  %vm1824_vm11 = vmmov %vm1817_vm0  ;;  %v932_v57 = vpop.eup %931 }
  0xc0   :  { %438 = vadd.xlane.f32.xlu1 %v437_v1  ;;  %273 = vadd.xlane.f32.xlu0 %v272_v34  ;;  %v269_v44 = vsel %vm1824_vm11, %v922_v18, 0.0  ;;  %v256_v50 = vmul.f32 1.442695, %v1376_v39  ;;  %v1386_v24 = vpop.permute.xlu1 %361  ;;  %vm1826_vm9 = vmmov %vm1817_vm0  ;;  %v934_v29 = vpop.eup %933  ;;  %v293_v62 = vsel %vm1828_vm15, %v932_v57, 0.0 }
  0xc1   :  { %v275_v13 = vsel %vm1826_vm9, %v926_v46, 0.0  ;;  %vm1827_vm11 = vmmov %vm1817_vm0  ;;  %v936_v59 = vpop.eup %935  ;;  %vm1776_vm7 = vcmp.eq.s32.totalorder %v1282_v20, %v1386_v24  ;;  %v1411_v34 = vpop.permute.xlu0 %376 }
  0xc2   :  { %939 = vpow2.f32 %v256_v50  ;;  %v281_v15 = vsel %vm1827_vm11, %v930_v30, 0.0  ;;  %vm1829_vm9 = vmmov %vm1817_vm0  ;;  %v296_v31 = vsel %vm1817_vm0, %v936_v59, 0.0  ;;  %v412_v54 = vsel %vm1776_vm7, %v1285_v5, 0.0 }
  0xc3   :  { %941 = vpow2.f32 %v258_v60  ;;  %v287_v0 = vsel %vm1829_vm9, %v934_v29, 0.0  ;;  %vm1830_vm15 = vmmov %vm1817_vm0  ;;  %vm1777_vm9 = vcmp.eq.s32.totalorder %v1282_v20, %v1397_v19 }
  0xc4   :  { %261 = vadd.xlane.f32.xlu1 %v260_v2  ;;  %279 = vadd.xlane.f32.xlu0 %v278_v25  ;;  %v1393_v4 = vpop.permute.xlu1 %364  ;;  %v440_v7 = vsel %vm1830_vm15, %v412_v54, 0.0  ;;  %vm1832_vm7 = vmmov %vm1817_vm0  ;;  %v415_v63 = vsel %vm1777_vm9, %v1346_v21, 0.0 }
  0xc5   :  { %vm1778_vm11 = vcmp.eq.s32.totalorder %v1282_v20, %v1393_v4 }
  0xc6   :  { %v413_v2 = vsel %vm1778_vm11, %v1326_v48, 0.0  ;;  %v1431_v48 = vpop.permute.xlu0 %382 }
  0xc7   :  { %v443_v5 = vsel %vm1817_vm0, %v413_v2, 0.0  ;;  %vm1783_vm9 = vcmp.eq.s32.totalorder %v1282_v20, %v1431_v48 }
  0xc8   :  { %270 = vadd.xlane.f32.xlu1 %v269_v44  ;;  %285 = vadd.xlane.f32.xlu0 %v284_v53  ;;  %v1407_v26 = vpop.permute.xlu1 %367 }
  0xc9   :  { %vm1779_vm15 = vcmp.eq.s32.totalorder %v1282_v20, %v1407_v26 }
  0xca   :  { %v414_v50 = vsel %vm1779_vm15, %v1299_v14, 0.0 }
  0xcb   :  { %v938_v17 = vpop.eup %937 }
  0xcc   :  { %276 = vadd.xlane.f32.xlu1 %v275_v13  ;;  %291 = vadd.xlane.f32.xlu0 %v290_v52  ;;  %v299_v10 = vsel %vm1831_vm14, %v938_v17, 0.0  ;;  %v1421_v25 = vpop.permute.xlu1 %373  ;;  %vm1780_vm14 = vcmp.eq.s32.totalorder %v1282_v20, %v1411_v34  ;;  %v1466_v13 = vld [vmem:[%s1755_s2] ss:$0 sm:$0xff] }
  0xcd   :  { %v417_v21 = vsel %vm1780_vm14, %v1331_v22, 0.0  ;;  %v419_v22 = vsel %vm1783_vm9, %v1367_v11, 0.0 }
  0xcf   :  { %v940_v1 = vpop.eup %939 }
  0xd0   :  { %282 = vadd.xlane.f32.xlu1 %v281_v15  ;;  %294 = vadd.xlane.f32.xlu0 %v293_v62  ;;  %v302_v18 = vsel %vm1832_vm7, %v940_v1, 0.0  ;;  %v942_v42 = vpop.eup %941  ;;  %vm1833_vm7 = vmmov %vm1817_vm0  ;;  %v1447_v53 = vpop.permute.xlu1 %379 }
  0xd1   :  { %v305_v44 = vsel %vm1817_vm0, %v942_v42, 0.0  ;;  %v449_v46 = vsel %vm1833_vm7, %v415_v63, 0.0  ;;  %vm1781_vm0 = vcmp.eq.s32.totalorder %v1282_v20, %v1421_v25  ;;  %v446_v55 = vsel %vm1833_vm7, %v414_v50, 0.0  ;;  %vm1834_vm11 = vmmov %vm1833_vm7 }
  0xd2   :  { %v455_v30 = vsel %vm1834_vm11, %v417_v21, 0.0  ;;  %v416_v14 = vsel %vm1781_vm0, %v1319_v45, 0.0  ;;  %vm1782_vm15 = vcmp.eq.s32.totalorder %v1282_v20, %v1447_v53  ;;  %vm1835_vm14 = vmmov %vm1833_vm7  ;;  %v461_v60 = vsel %vm1833_vm7, %v419_v22, 0.0 }
  0xd3   :  { %v452_v57 = vsel %vm1835_vm14, %v416_v14, 0.0  ;;  %v418_v45 = vsel %vm1782_vm15, %v1353_v8, 0.0  ;;  %vm1836_vm11 = vcmp.eq.s32.totalorder %v1282_v20, %v1289_v27  ;;  %vm1837_vm14 = vmmov %vm1833_vm7  ;;  %vm1838_vm0 = vcmp.eq.s32.totalorder %v1282_v20, %v1304_v38 }
  0xd4   :  { %288 = vadd.xlane.f32.xlu1 %v287_v0  ;;  %297 = vadd.xlane.f32.xlu0 %v296_v31  ;;  %v477_v11 = vsel %vm1836_vm11, %v1466_v13, 0.0  ;;  %v1476_v52 = vpop.permute.xlu1 %385  ;;  %v458_v29 = vsel %vm1837_vm14, %v418_v45, 0.0  ;;  %v476_v62 = vsel %vm1838_vm0, %v1466_v13, 0.0  ;;  %vm1839_vm15 = vcmp.eq.s32.totalorder %v1282_v20, %v1302_v35  ;;  %v1496_v31 = vpop.permute.xlu0 %388  ;;  %vm1840_vm14 = vmmov %vm1833_vm7 }
  0xd5   :  { %v495_v15 = vsel %vm1833_vm7, %v477_v11, 0.0  ;;  %v478_v8 = vsel %vm1839_vm15, %v1466_v13, 0.0  ;;  %v1018_v27 = vmov 0.0   ;;  %vm1784_vm11 = vcmp.eq.s32.totalorder %v1282_v20, %v1476_v52  ;;  %vm1842_vm9 = vmmov %vm1833_vm7 }
  0xd6   :  { %v848_v59 = vsel %vm1158_vm1, 1.0, %v1018_v27  ;;  %v847_v0 = vsel %vm1171_vm3, 1.0, %v1018_v27  ;;  %vm716_vm0 = vcmask 7168   ;;  %v492_v38 = vsel %vm1840_vm14, %v476_v62, 0.0 }
  0xd7   :  { %v498_v35 = vsel %vm1833_vm7, %v478_v8, 0.0  ;;  %v792_v17 = vsel %vm716_vm0, %v848_v59, 0.0  ;;  %v791_v54 = vsel %vm716_vm0, %v847_v0, 0.0  ;;  %vm1841_vm15 = vcmp.eq.s32.totalorder %v1282_v20, %v1323_v9 }
  0xd8   :  { %441 = vadd.xlane.f32.xlu1 %v440_v7  ;;  %300 = vadd.xlane.f32.xlu0 %v299_v10  ;;  %v420_v7 = vsel %vm1784_vm11, %v1376_v39, 0.0  ;;  %v479_v10 = vsel %vm1841_vm15, %v1466_v13, 0.0  ;;  %v849_v1 = vsel %vm1167_vm2, 1.0, %v1018_v27  ;;  %vm405_vm14 = vcmp.eq.s32.totalorder %v1282_v20, %v1496_v31 }
  0xd9   :  { %v793_v2 = vadd.f32 %v792_v17, %v791_v54  ;;  %v794_v42 = vsel %vm716_vm0, %v849_v1, 0.0  ;;  %vm1843_vm15 = vcmp.eq.s32.totalorder %v1282_v20, %v1357_v32  ;;  %v421_v39 = vsel %vm405_vm14, %v1382_v47, 0.0 }
  0xda   :  { %v481_v9 = vsel %vm1843_vm15, %v1466_v13, 0.0  ;;  %v850_v63 = vsel %vm1185_vm4, 1.0, %v1018_v27  ;;  %v467_v50 = vsel %vm1833_vm7, %v421_v39, 0.0  ;;  %vm1845_vm15 = vcmp.eq.s32.totalorder %v1282_v20, %v1393_v4 }
  0xdb   :  { %v796_v21 = vsel %vm716_vm0, %v850_v63, 0.0  ;;  %v483_v32 = vsel %vm1845_vm15, %v1466_v13, 0.0  ;;  %vm1846_vm11 = vcmp.eq.s32.totalorder %v1282_v20, %v1339_v61  ;;  %vm1848_vm15 = vcmp.eq.s32.totalorder %v1282_v20, %v1397_v19 }
  0xdc   :  { %444 = vadd.xlane.f32.xlu1 %v443_v5  ;;  %303 = vadd.xlane.f32.xlu0 %v302_v18  ;;  %v464_v5 = vsel %vm1833_vm7, %v420_v7, 0.0  ;;  %v501_v18 = vsel %vm1842_vm9, %v479_v10, 0.0  ;;  %vm1844_vm9 = vmmov %vm1833_vm7  ;;  %v480_v47 = vsel %vm1846_vm11, %v1466_v13, 0.0  ;;  %v485_v4 = vsel %vm1848_vm15, %v1466_v13, 0.0 }
  0xdd   :  { %v504_v22 = vsel %vm1833_vm7, %v480_v47, 0.0  ;;  %vm1849_vm11 = vcmp.eq.s32.totalorder %v1282_v20, %v1386_v24  ;;  %vm1851_vm15 = vcmp.eq.s32.totalorder %v1282_v20, %v1411_v34  ;;  %v853_v62 = vsel %vm1230_vm10, 1.0, %v1018_v27 }
  0xde   :  { %v482_v61 = vsel %vm1849_vm11, %v1466_v13, 0.0  ;;  %v487_v19 = vsel %vm1851_vm15, %v1466_v13, 0.0  ;;  %vm1852_vm11 = vcmp.eq.s32.totalorder %v1282_v20, %v1407_v26  ;;  %vm1854_vm15 = vcmp.eq.s32.totalorder %v1282_v20, %v1431_v48 }
  0xdf   :  { %v484_v24 = vsel %vm1852_vm11, %v1466_v13, 0.0  ;;  %v489_v34 = vsel %vm1854_vm15, %v1466_v13, 0.0  ;;  %vm1855_vm11 = vcmp.eq.s32.totalorder %v1282_v20, %v1421_v25  ;;  %v491_v48 = vsel %vm405_vm14, %v1466_v13, 0.0 }
  0xe0   :  { %306 = vadd.xlane.f32.xlu0 %v305_v44  ;;  %450 = vadd.xlane.f32.xlu1 %v449_v46  ;;  %v795_v44 = vadd.f32 %v794_v42, %v793_v2  ;;  %v507_v46 = vsel %vm1844_vm9, %v481_v9, 0.0  ;;  %vm1847_vm9 = vmmov %vm1833_vm7  ;;  %v516_v0 = vsel %vm1833_vm7, %v484_v24, 0.0  ;;  %v486_v26 = vsel %vm1855_vm11, %v1466_v13, 0.0 }
  0xe1   :  { %v513_v14 = vsel %vm1847_vm9, %v483_v32, 0.0  ;;  %vm1850_vm9 = vmmov %vm1833_vm7  ;;  %v522_v7 = vsel %vm1833_vm7, %v486_v26, 0.0  ;;  %vm1857_vm15 = vcmp.eq.s32.totalorder %v1282_v20, %v1447_v53  ;;  %v855_v1 = vsel %vm1248_vm13, 1.0, %v1018_v27 }
  0xe2   :  { %v519_v11 = vsel %vm1850_vm9, %v485_v4, 0.0  ;;  %vm1853_vm9 = vmmov %vm1833_vm7  ;;  %v488_v25 = vsel %vm1857_vm15, %v1466_v13, 0.0  ;;  %v806_v42 = vsel %vm716_vm0, %v855_v1, 0.0  ;;  %vm1860_vm14 = vcmp.eq.s32.totalorder %v1282_v20, %v1476_v52 }
  0xe3   :  { %v525_v59 = vsel %vm1853_vm9, %v487_v19, 0.0  ;;  %vm1856_vm9 = vmmov %vm1833_vm7  ;;  %v490_v31 = vsel %vm1860_vm14, %v1466_v13, 0.0  ;;  %v856_v53 = vsel %vm1189_vm5, 1.0, %v1018_v27  ;;  %vm1861_vm15 = vnez %v1812_v33 }
  0xe4   :  { %447 = vadd.xlane.f32.xlu0 %v446_v55  ;;  %456 = vadd.xlane.f32.xlu1 %v455_v30  ;;  %v851_v55 = vsel %vm1200_vm6, 1.0, %v1018_v27  ;;  %v797_v30 = vadd.f32 %v796_v21, %v795_v44  ;;  %v531_v54 = vsel %vm1856_vm9, %v489_v34, 0.0  ;;  %vm1858_vm11 = vmmov %vm1833_vm7  ;;  %v534_v39 = vsel %vm1833_vm7, %v490_v31, 0.0 }
  0xe5   :  { %vm1859_vm9 = vmmov %vm1833_vm7  ;;  %v808_v63 = vsel %vm716_vm0, %v856_v53, 0.0  ;;  %v857_v44 = vsel %vm1861_vm15, 1.0, %v1018_v27  ;;  %vm1864_vm14 = vnez %v1802_v6  ;;  %vm1866_vm15 = vnez %v1806_v16 }
  0xe6   :  { %v860_v47 = vsel %vm1864_vm14, 1.0, %v1018_v27 }
  0xe8   :  { %453 = vadd.xlane.f32.xlu0 %v452_v57  ;;  %462 = vadd.xlane.f32.xlu1 %v461_v60  ;;  %v798_v57 = vsel %vm716_vm0, %v851_v55, 0.0  ;;  %v852_v60 = vsel %vm1218_vm8, 1.0, %v1018_v27 }
  0xe9   :  { %v799_v45 = vadd.f32 %v798_v57, %v797_v30  ;;  %v862_v57 = vsel %vm1866_vm15, 1.0, %v1018_v27 }
  0xec   :  { %459 = vadd.xlane.f32.xlu0 %v458_v29  ;;  %496 = vadd.xlane.f32.xlu1 %v495_v15  ;;  %v510_v29 = vsel %vm1833_vm7, %v482_v61, 0.0  ;;  %v800_v15 = vsel %vm716_vm0, %v852_v60, 0.0  ;;  %vm1865_vm7 = vnez %v1816_v40  ;;  %v820_v60 = vsel %vm716_vm0, %v862_v57, 0.0 }
  0xed   :  { %v801_v8 = vadd.f32 %v800_v15, %v799_v45 }
  0xf0   :  { %493 = vadd.xlane.f32.xlu0 %v492_v38  ;;  %499 = vadd.xlane.f32.xlu1 %v498_v35  ;;  %v802_v38 = vsel %vm716_vm0, %v853_v62, 0.0  ;;  %v854_v35 = vsel %vm1242_vm12, 1.0, %v1018_v27 }
  0xf1   :  { %v803_v17 = vadd.f32 %v802_v38, %v801_v8  ;;  %v804_v10 = vsel %vm716_vm0, %v854_v35, 0.0 }
  0xf3   :  { %v805_v2 = vadd.f32 %v804_v10, %v803_v17 }
  0xf4   :  { %465 = vadd.xlane.f32.xlu0 %v464_v5  ;;  %502 = vadd.xlane.f32.xlu1 %v501_v18  ;;  %v537_v5 = vsel %vm1858_vm11, %v491_v48, 0.0  ;;  %v528_v18 = vsel %vm1859_vm9, %v488_v25, 0.0  ;;  %vm1862_vm11 = vnez %v1798_v58  ;;  %vm1863_vm9 = vnez %v1814_v37 }
  0xf5   :  { %v807_v9 = vadd.f32 %v806_v42, %v805_v2  ;;  %v858_v20 = vsel %vm1862_vm11, 1.0, %v1018_v27  ;;  %v859_v52 = vsel %vm1863_vm9, 1.0, %v1018_v27 }
  0xf6   :  { %v812_v21 = vsel %vm716_vm0, %v858_v20, 0.0  ;;  %v814_v32 = vsel %vm716_vm0, %v859_v52, 0.0 }
  0xf8   :  { %508 = vadd.xlane.f32.xlu1 %v507_v46  ;;  %468 = vadd.xlane.f32.xlu0 %v467_v50  ;;  %v809_v46 = vadd.f32 %v808_v63, %v807_v9  ;;  %v810_v50 = vsel %vm716_vm0, %v857_v44, 0.0 }
  0xfa   :  { %v811_v13 = vadd.f32 %v810_v50, %v809_v46 }
  0xfc   :  { %514 = vadd.xlane.f32.xlu1 %v513_v14  ;;  %505 = vadd.xlane.f32.xlu0 %v504_v22  ;;  %v813_v55 = vadd.f32 %v812_v21, %v811_v13  ;;  %v816_v14 = vsel %vm716_vm0, %v860_v47, 0.0  ;;  %v861_v22 = vsel %vm1865_vm7, 1.0, %v1018_v27 }
  0xfd   :  { %v818_v61 = vsel %vm716_vm0, %v861_v22, 0.0 }
  0xfe   :  { %v815_v30 = vadd.f32 %v814_v32, %v813_v55 }
 0x100   :  { %520 = vadd.xlane.f32.xlu1 %v519_v11  ;;  %511 = vadd.xlane.f32.xlu0 %v510_v29  ;;  %v817_v4 = vadd.f32 %v816_v14, %v815_v30 }
 0x102   :  { %v819_v45 = vadd.f32 %v818_v61, %v817_v4 }
 0x104   :  { %526 = vadd.xlane.f32.xlu1 %v525_v59  ;;  %517 = vadd.xlane.f32.xlu0 %v516_v0  ;;  %v821_v11 = vadd.f32 %v820_v60, %v819_v45 }
 0x108   :  { %532 = vadd.xlane.f32.xlu1 %v531_v54  ;;  %523 = vadd.xlane.f32.xlu0 %v522_v7 }
 0x10c   :  { %538 = vadd.xlane.f32.xlu1 %v537_v5  ;;  %529 = vadd.xlane.f32.xlu0 %v528_v18 }
 0x110   :  { %535 = vadd.xlane.f32.xlu0 %v534_v39  ;;  %822 = vadd.xlane.f32.xlu1 %v821_v11 }
 0x139   :  { %v427_v29 = vpop.xlane.xlu1 %426 }
 0x13d   :  { %v430_v15 = vpop.xlane.xlu1 %429  ;;  %v424_v19 = vpop.xlane.xlu0 %423 }
 0x141   :  { %v433_v24 = vpop.xlane.xlu1 %432  ;;  %v265_v62 = vpop.xlane.xlu0 %264 }
 0x142   :  { %943 = vlog2.f32 %v265_v62 }
 0x145   :  { %v436_v8 = vpop.xlane.xlu1 %435  ;;  %v268_v59 = vpop.xlane.xlu0 %267 }
 0x146   :  { %945 = vlog2.f32 %v268_v59 }
 0x149   :  { %v1635_v0 = vpop.xlane.xlu1 %438  ;;  %v274_v27 = vpop.xlane.xlu0 %273 }
 0x14a   :  { %947 = vlog2.f32 %v274_v27 }
 0x14d   :  { %v262_v38 = vpop.xlane.xlu1 %261  ;;  %v280_v34 = vpop.xlane.xlu0 %279 }
 0x14e   :  { %949 = vlog2.f32 %v262_v38 }
 0x14f   :  { %v944_v26 = vpop.eup %943  ;;  %951 = vlog2.f32 %v280_v34 }
 0x150   :  { %v311_v35 = vmul.f32 0.6931472, %v944_v26 }
 0x151   :  { %v271_v17 = vpop.xlane.xlu1 %270  ;;  %v286_v54 = vpop.xlane.xlu0 %285 }
 0x152   :  { %v541_v7 = vsub.f32 %v427_v29, %v311_v35  ;;  %953 = vlog2.f32 %v271_v17 }
 0x153   :  { %v946_v10 = vpop.eup %945 }
 0x154   :  { %v313_v48 = vmul.f32 0.6931472, %v946_v10  ;;  %v1637_v2 = vmin.f32 %v541_v7, 0.0 }
 0x155   :  { %v277_v25 = vpop.xlane.xlu1 %276  ;;  %v292_v1 = vpop.xlane.xlu0 %291 }
 0x156   :  { %v542_v5 = vsub.f32 %v430_v15, %v313_v48  ;;  %955 = vlog2.f32 %v277_v25  ;;  %v574_v53 = vmul.f32 1.442695, %v1637_v2 }
 0x157   :  { %v948_v18 = vpop.eup %947 }
 0x158   :  { %v1640_v9 = vmin.f32 %v542_v5, 0.0  ;;  %v317_v63 = vmul.f32 0.6931472, %v948_v18 }
 0x159   :  { %v283_v42 = vpop.xlane.xlu1 %282  ;;  %v295_v31 = vpop.xlane.xlu0 %294 }
 0x15a   :  { %957 = vlog2.f32 %v283_v42  ;;  %v576_v20 = vmul.f32 1.442695, %v1640_v9  ;;  %v544_v32 = vsub.f32 %v436_v8, %v317_v63 }
 0x15b   :  { %v950_v39 = vpop.eup %949  ;;  %959 = vlog2.f32 %v286_v54 }
 0x15c   :  { %v309_v44 = vmul.f32 0.6931472, %v950_v39  ;;  %961 = vlog2.f32 %v295_v31  ;;  %v952_v13 = vpop.eup %951  ;;  %v1646_v45 = vmin.f32 %v544_v32, 0.0 }
 0x15d   :  { %v289_v46 = vpop.xlane.xlu1 %288  ;;  %v298_v50 = vpop.xlane.xlu0 %297  ;;  %963 = vpow2.f32 %v574_v53  ;;  %v321_v14 = vmul.f32 0.6931472, %v952_v13 }
 0x15e   :  { %v540_v52 = vsub.f32 %v424_v19, %v309_v44  ;;  %965 = vlog2.f32 %v289_v46  ;;  %v580_v27 = vmul.f32 1.442695, %v1646_v45 }
 0x15f   :  { %v954_v21 = vpop.eup %953  ;;  %967 = vlog2.f32 %v292_v1 }
 0x160   :  { %v315_v47 = vmul.f32 0.6931472, %v954_v21  ;;  %v1643_v55 = vmin.f32 %v540_v52, 0.0  ;;  %969 = vpow2.f32 %v576_v20 }
 0x161   :  { %v442_v30 = vpop.xlane.xlu1 %441  ;;  %v301_v22 = vpop.xlane.xlu0 %300 }
 0x162   :  { %v543_v57 = vsub.f32 %v433_v24, %v315_v47  ;;  %971 = vlog2.f32 %v301_v22  ;;  %v572_v4 = vmul.f32 1.442695, %v1643_v55  ;;  %v546_v60 = vsub.f32 %v442_v30, %v321_v14 }
 0x163   :  { %v956_v61 = vpop.eup %955  ;;  %973 = vlog2.f32 %v298_v50 }
 0x164   :  { %v319_v11 = vmul.f32 0.6931472, %v956_v61  ;;  %975 = vpow2.f32 %v572_v4  ;;  %v1648_v29 = vmin.f32 %v543_v57, 0.0  ;;  %v1651_v59 = vmin.f32 %v546_v60, 0.0 }
 0x165   :  { %v445_v15 = vpop.xlane.xlu1 %444  ;;  %v304_v19 = vpop.xlane.xlu0 %303 }
 0x166   :  { %v545_v62 = vsub.f32 %v1635_v0, %v319_v11  ;;  %v578_v24 = vmul.f32 1.442695, %v1648_v29  ;;  %v584_v0 = vmul.f32 1.442695, %v1651_v59 }
 0x167   :  { %v958_v8 = vpop.eup %957 }
 0x168   :  { %v960_v38 = vpop.eup %959  ;;  %v323_v34 = vmul.f32 0.6931472, %v958_v8  ;;  %v1655_v26 = vmin.f32 %v545_v62, 0.0  ;;  %977 = vpow2.f32 %v578_v24 }
 0x169   :  { %v962_v35 = vpop.eup %961  ;;  %v451_v17 = vpop.xlane.xlu1 %450  ;;  %v325_v25 = vmul.f32 0.6931472, %v960_v38  ;;  %979 = vpow2.f32 %v580_v27 }
 0x16a   :  { %v307_v54 = vpop.xlane.xlu0 %306  ;;  %v964_v7 = vpop.eup %963  ;;  %v547_v10 = vsub.f32 %v445_v15, %v323_v34  ;;  %v582_v1 = vmul.f32 1.442695, %v1655_v26  ;;  %981 = vlog2.f32 %v304_v19  ;;  %v331_v31 = vmul.f32 0.6931472, %v962_v35 }
 0x16b   :  { %v966_v48 = vpop.eup %965  ;;  %v605_v63 = vsub.f32 1.0, %v964_v7 }
 0x16c   :  { %v968_v5 = vpop.eup %967  ;;  %v1659_v18 = vmin.f32 %v547_v10, 0.0  ;;  %v327_v42 = vmul.f32 0.6931472, %v966_v48  ;;  %983 = vpow2.f32 %v582_v1 }
 0x16d   :  { %v457_v53 = vpop.xlane.xlu1 %456  ;;  %v970_v44 = vpop.eup %969  ;;  %985 = vpow2.f32 %v584_v0  ;;  %v329_v21 = vmul.f32 0.6931472, %v968_v5  ;;  %v621_v62 = vmax.f32 %v605_v63, 0.0 }
 0x16e   :  { %v448_v39 = vpop.xlane.xlu0 %447  ;;  %v586_v46 = vmul.f32 1.442695, %v1659_v18  ;;  %v549_v50 = vsub.f32 %v451_v17, %v327_v42  ;;  %v551_v20 = vsub.f32 %v457_v53, %v331_v31  ;;  %v606_v60 = vsub.f32 1.0, %v970_v44 }
 0x16f   :  { %v548_v13 = vsub.f32 %v448_v39, %v325_v25  ;;  %v972_v52 = vpop.eup %971  ;;  %v637_v25 = vmul.f32 %v621_v62, %v621_v62 }
 0x170   :  { %v974_v32 = vpop.eup %973  ;;  %987 = vpow2.f32 %v586_v46  ;;  %v1662_v47 = vmin.f32 %v549_v50, 0.0  ;;  %v1664_v30 = vmin.f32 %v551_v20, 0.0  ;;  %v335_v4 = vmul.f32 0.6931472, %v972_v52 }
 0x171   :  { %v1666_v14 = vmin.f32 %v548_v13, 0.0  ;;  %v976_v22 = vpop.eup %975  ;;  %989 = vlog2.f32 %v307_v54  ;;  %v463_v57 = vpop.xlane.xlu1 %462  ;;  %v333_v34 = vmul.f32 0.6931472, %v974_v32  ;;  %v622_v7 = vmax.f32 %v606_v60, 0.0 }
 0x172   :  { %v454_v61 = vpop.xlane.xlu0 %453  ;;  %v590_v11 = vmul.f32 1.442695, %v1662_v47  ;;  %v594_v15 = vmul.f32 1.442695, %v1664_v30  ;;  %v553_v24 = vsub.f32 %v463_v57, %v335_v4  ;;  %v604_v27 = vsub.f32 1.0, %v976_v22 }
 0x173   :  { %v550_v19 = vsub.f32 %v454_v61, %v329_v21  ;;  %v588_v8 = vmul.f32 1.442695, %v1666_v14  ;;  %v638_v50 = vmul.f32 %v622_v7, %v622_v7 }
 0x174   :  { %991 = vpow2.f32 %v590_v11  ;;  %v1673_v35 = vmin.f32 %v553_v24, 0.0  ;;  %v620_v10 = vmax.f32 %v604_v27, 0.0 }
 0x175   :  { %v1671_v38 = vmin.f32 %v550_v19, 0.0  ;;  %993 = vpow2.f32 %v594_v15  ;;  %v497_v17 = vpop.xlane.xlu1 %496  ;;  %v978_v48 = vpop.eup %977 }
 0x176   :  { %v460_v54 = vpop.xlane.xlu0 %459  ;;  %v653_v1 = vsub.f32 0.0, %v497_v17  ;;  %995 = vpow2.f32 %v588_v8  ;;  %v598_v42 = vmul.f32 1.442695, %v1673_v35  ;;  %v607_v31 = vsub.f32 1.0, %v978_v48  ;;  %v980_v53 = vpop.eup %979 }
 0x177   :  { %v592_v0 = vmul.f32 1.442695, %v1671_v38  ;;  %v552_v5 = vsub.f32 %v460_v54, %v333_v34  ;;  %v982_v44 = vpop.eup %981  ;;  %v636_v20 = vmul.f32 %v620_v10, %v620_v10  ;;  %v608_v60 = vsub.f32 1.0, %v980_v53 }
 0x178   :  { %v669_v39 = vmul.f32 %v653_v1, %v637_v25  ;;  %997 = vpow2.f32 %v598_v42  ;;  %v623_v52 = vmax.f32 %v607_v31, 0.0  ;;  %v337_v62 = vmul.f32 0.6931472, %v982_v44 }
 0x179   :  { %v1677_v63 = vmin.f32 %v552_v5, 0.0  ;;  %v500_v46 = vpop.xlane.xlu1 %499  ;;  %v984_v21 = vpop.eup %983  ;;  %999 = vpow2.f32 %v592_v0  ;;  %v624_v1 = vmax.f32 %v608_v60, 0.0 }
 0x17a   :  { %v494_v13 = vpop.xlane.xlu0 %493  ;;  %v685_v32 = vmul.f32 %v669_v39, %v1637_v2  ;;  %v654_v22 = vsub.f32 0.0, %v500_v46  ;;  %v609_v61 = vsub.f32 1.0, %v984_v21  ;;  %v986_v11 = vpop.eup %985  ;;  %v639_v24 = vmul.f32 %v623_v52, %v623_v52 }
 0x17b   :  { %v652_v57 = vsub.f32 0.0, %v494_v13  ;;  %v596_v4 = vmul.f32 1.442695, %v1677_v63  ;;  %v610_v53 = vsub.f32 1.0, %v986_v11  ;;  %v640_v11 = vmul.f32 %v624_v1, %v624_v1 }
 0x17c   :  { %v670_v15 = vmul.f32 %v654_v22, %v638_v50  ;;  %v625_v17 = vmax.f32 %v609_v61, 0.0  ;;  %v701_v7 = vsel %vm1158_vm1, %v685_v32, 0.0  ;;  %vm1867_vm1 = vnez %v1812_v33 }
 0x17d   :  { %v668_v19 = vmul.f32 %v652_v57, %v636_v20  ;;  %v988_v8 = vpop.eup %987  ;;  %v503_v27 = vpop.xlane.xlu1 %502  ;;  %1001 = vpow2.f32 %v596_v4  ;;  %v718_v36 = vsel %vm716_vm0, %v701_v7, 0.0 }
 0x17e   :  { %v466_v34 = vpop.xlane.xlu0 %465  ;;  %v990_v54 = vpop.eup %989  ;;  %v655_v10 = vsub.f32 0.0, %v503_v27  ;;  %v686_v0 = vmul.f32 %v670_v15, %v1640_v9  ;;  %v611_v25 = vsub.f32 1.0, %v988_v8  ;;  %v626_v8 = vmax.f32 %v610_v53, 0.0 }
 0x17f   :  { %v684_v2 = vmul.f32 %v668_v19, %v1643_v55  ;;  %v554_v48 = vsub.f32 %v466_v34, %v337_v62  ;;  %v641_v55 = vmul.f32 %v625_v17, %v625_v17  ;;  %v339_v50 = vmul.f32 0.6931472, %v990_v54 }
 0x180   :  { %v671_v42 = vmul.f32 %v655_v10, %v639_v24  ;;  %v627_v21 = vmax.f32 %v611_v25, 0.0  ;;  %v702_v32 = vsel %vm1167_vm2, %v686_v0, 0.0  ;;  %v642_v53 = vmul.f32 %v626_v8, %v626_v8 }
 0x181   :  { %v700_v5 = vsel %vm1171_vm3, %v684_v2, 0.0  ;;  %v1687_v31 = vmin.f32 %v554_v48, 0.0  ;;  %v992_v39 = vpop.eup %991  ;;  %v509_v46 = vpop.xlane.xlu1 %508  ;;  %v720_v41 = vsel %vm716_vm0, %v702_v32, 0.0 }
 0x182   :  { %v717_v44 = vsel %vm716_vm0, %v700_v5, 0.0  ;;  %v469_v20 = vpop.xlane.xlu0 %468  ;;  %v994_v13 = vpop.eup %993  ;;  %v687_v9 = vmul.f32 %v671_v42, %v1648_v29  ;;  %v657_v43 = vsub.f32 0.0, %v509_v46  ;;  %v613_v4 = vsub.f32 1.0, %v992_v39 }
 0x183   :  { %v600_v52 = vmul.f32 1.442695, %v1687_v31  ;;  %v719_v22 = vadd.f32 %v718_v36, %v717_v44  ;;  %v555_v57 = vsub.f32 %v469_v20, %v339_v50  ;;  %v996_v61 = vpop.eup %995  ;;  %v615_v24 = vsub.f32 1.0, %v994_v13 }
 0x184   :  { %v673_v60 = vmul.f32 %v657_v43, %v641_v55  ;;  %v703_v15 = vsel %vm1185_vm4, %v687_v9, 0.0  ;;  %v643_v34 = vmul.f32 %v627_v21, %v627_v21  ;;  %v629_v48 = vmax.f32 %v613_v4, 0.0 }
 0x185   :  { %1003 = vpow2.f32 %v600_v52  ;;  %v1697_v19 = vmin.f32 %v555_v57, 0.0  ;;  %v515_v29 = vpop.xlane.xlu1 %514  ;;  %v998_v27 = vpop.eup %997  ;;  %v721_v2 = vadd.f32 %v720_v41, %v719_v22  ;;  %v612_v0 = vsub.f32 1.0, %v996_v61 }
 0x186   :  { %v506_v62 = vpop.xlane.xlu0 %505  ;;  %v659_v17 = vsub.f32 0.0, %v515_v29  ;;  %v1000_v7 = vpop.eup %999  ;;  %v722_v49 = vsel %vm716_vm0, %v703_v15, 0.0  ;;  %v689_v25 = vmul.f32 %v673_v60, %v1655_v26  ;;  %v631_v36 = vmax.f32 %v615_v24, 0.0 }
 0x187   :  { %v656_v54 = vsub.f32 0.0, %v506_v62  ;;  %v602_v10 = vmul.f32 1.442695, %v1697_v19  ;;  %v617_v44 = vsub.f32 1.0, %v998_v27  ;;  %v614_v20 = vsub.f32 1.0, %v1000_v7 }
 0x188   :  { %v675_v1 = vmul.f32 %v659_v17, %v643_v34  ;;  %v723_v13 = vadd.f32 %v722_v49, %v721_v2  ;;  %v645_v9 = vmul.f32 %v629_v48, %v629_v48  ;;  %v628_v52 = vmax.f32 %v612_v0, 0.0 }
 0x189   :  { %v672_v5 = vmul.f32 %v656_v54, %v640_v11  ;;  %1005 = vpow2.f32 %v602_v10  ;;  %v521_v42 = vpop.xlane.xlu1 %520  ;;  %v705_v26 = vsel %vm1218_vm8, %v689_v25, 0.0  ;;  %v647_v61 = vmul.f32 %v631_v36, %v631_v36 }
 0x18a   :  { %v512_v39 = vpop.xlane.xlu0 %511  ;;  %v661_v46 = vsub.f32 0.0, %v521_v42  ;;  %v1002_v43 = vpop.eup %1001  ;;  %v691_v21 = vmul.f32 %v675_v1, %v1659_v18  ;;  %v633_v11 = vmax.f32 %v617_v44, 0.0  ;;  %v630_v8 = vmax.f32 %v614_v20, 0.0 }
 0x18b   :  { %v688_v55 = vmul.f32 %v672_v5, %v1646_v45  ;;  %v658_v50 = vsub.f32 0.0, %v512_v39  ;;  %v726_v3 = vsel %vm716_vm0, %v705_v26, 0.0  ;;  %v644_v24 = vmul.f32 %v628_v52, %v628_v52 }
 0x18c   :  { %v677_v4 = vmul.f32 %v661_v46, %v645_v9  ;;  %v616_v27 = vsub.f32 1.0, %v1002_v43  ;;  %v707_v56 = vsel %vm1242_vm12, %v691_v21, 0.0  ;;  %v649_v48 = vmul.f32 %v633_v11, %v633_v11 }
 0x18d   :  { %v704_v32 = vsel %vm1200_vm6, %v688_v55, 0.0  ;;  %v674_v22 = vmul.f32 %v658_v50, %v642_v53  ;;  %v527_v45 = vpop.xlane.xlu1 %526  ;;  %v646_v1 = vmul.f32 %v630_v8, %v630_v8  ;;  %v730_v23 = vsel %vm716_vm0, %v707_v56, 0.0 }
 0x18e   :  { %v724_v57 = vsel %vm716_vm0, %v704_v32, 0.0  ;;  %v518_v60 = vpop.xlane.xlu0 %517  ;;  %v663_v62 = vsub.f32 0.0, %v527_v45  ;;  %v693_v7 = vmul.f32 %v677_v4, %v1662_v47  ;;  %v632_v12 = vmax.f32 %v616_v27, 0.0 }
 0x18f   :  { %v725_v15 = vadd.f32 %v724_v57, %v723_v13  ;;  %v690_v29 = vmul.f32 %v674_v22, %v1651_v59  ;;  %v660_v18 = vsub.f32 0.0, %v518_v60 }
 0x190   :  { %v679_v17 = vmul.f32 %v663_v62, %v647_v61  ;;  %v709_v55 = vsel %vm1189_vm5, %v693_v7, 0.0  ;;  %v648_v26 = vmul.f32 %v632_v12, %v632_v12 }
 0x191   :  { %v727_v41 = vadd.f32 %v726_v3, %v725_v15  ;;  %v706_v34 = vsel %vm1230_vm10, %v690_v29, 0.0  ;;  %v676_v2 = vmul.f32 %v660_v18, %v644_v24  ;;  %v533_v10 = vpop.xlane.xlu1 %532  ;;  %v734_v21 = vsel %vm716_vm0, %v709_v55, 0.0 }
 0x192   :  { %v1004_v54 = vpop.eup %1003  ;;  %v728_v59 = vsel %vm716_vm0, %v706_v34, 0.0  ;;  %v524_v0 = vpop.xlane.xlu0 %523  ;;  %v665_v25 = vsub.f32 0.0, %v533_v10  ;;  %v695_v39 = vmul.f32 %v679_v17, %v1664_v30 }
 0x193   :  { %v729_v49 = vadd.f32 %v728_v59, %v727_v41  ;;  %v662_v5 = vsub.f32 0.0, %v524_v0  ;;  %v692_v42 = vmul.f32 %v676_v2, %v1666_v14  ;;  %v618_v53 = vsub.f32 1.0, %v1004_v54 }
 0x194   :  { %v681_v47 = vmul.f32 %v665_v25, %v649_v48  ;;  %v711_v51 = vsel %vm1862_vm11, %v695_v39, 0.0 }
 0x195   :  { %v731_v36 = vadd.f32 %v730_v23, %v729_v49  ;;  %v678_v44 = vmul.f32 %v662_v5, %v646_v1  ;;  %v708_v46 = vsel %vm1248_vm13, %v692_v42, 0.0  ;;  %v634_v14 = vmax.f32 %v618_v53, 0.0  ;;  %v539_v22 = vpop.xlane.xlu1 %538 }
 0x196   :  { %v530_v50 = vpop.xlane.xlu0 %529  ;;  %v1006_v20 = vpop.eup %1005  ;;  %v732_v13 = vsel %vm716_vm0, %v708_v46, 0.0  ;;  %v697_v32 = vmul.f32 %v681_v47, %v1673_v35  ;;  %v667_v62 = vsub.f32 0.0, %v539_v22  ;;  %v738_v8 = vsel %vm716_vm0, %v711_v51, 0.0 }
 0x197   :  { %v694_v9 = vmul.f32 %v678_v44, %v1671_v38  ;;  %v733_v52 = vadd.f32 %v732_v13, %v731_v36  ;;  %v619_v43 = vsub.f32 1.0, %v1006_v20  ;;  %v664_v30 = vsub.f32 0.0, %v530_v50 }
 0x198   :  { %v650_v60 = vmul.f32 %v634_v14, %v634_v14  ;;  %v713_v33 = vsel %vm1864_vm14, %v697_v32, 0.0 }
 0x199   :  { %v710_v28 = vsel %vm1867_vm1, %v694_v9, 0.0  ;;  %v735_v57 = vadd.f32 %v734_v21, %v733_v52  ;;  %v635_v38 = vmax.f32 %v619_v43, 0.0  ;;  %v680_v45 = vmul.f32 %v664_v30, %v648_v26 }
 0x19a   :  { %v736_v4 = vsel %vm716_vm0, %v710_v28, 0.0  ;;  %v536_v61 = vpop.xlane.xlu0 %535  ;;  %v742_v17 = vsel %vm716_vm0, %v713_v33, 0.0 }
 0x19b   :  { %v666_v11 = vsub.f32 0.0, %v536_v61  ;;  %v737_v15 = vadd.f32 %v736_v4, %v735_v57  ;;  %v651_v29 = vmul.f32 %v635_v38, %v635_v38  ;;  %v696_v58 = vmul.f32 %v680_v45, %v1677_v63 }
 0x19d   :  { %v682_v35 = vmul.f32 %v666_v11, %v650_v60  ;;  %v683_v3 = vmul.f32 %v667_v62, %v651_v29  ;;  %v712_v24 = vsel %vm1863_vm9, %v696_v58, 0.0  ;;  %v739_v18 = vadd.f32 %v738_v8, %v737_v15 }
 0x19e   :  { %v740_v27 = vsel %vm716_vm0, %v712_v24, 0.0 }
 0x19f   :  { %v698_v56 = vmul.f32 %v682_v35, %v1687_v31  ;;  %v699_v41 = vmul.f32 %v683_v3, %v1697_v19  ;;  %v741_v34 = vadd.f32 %v740_v27, %v739_v18  ;;  %v823_v31 = vpop.xlane.xlu1 %822 }
 0x1a0   :  { %v824_v10 = vrot.slane %v823_v31, 4 }
 0x1a1   :  { %v714_v63 = vsel %vm1865_vm7, %v698_v56, 0.0  ;;  %v715_v6 = vsel %vm1866_vm15, %v699_v41, 0.0  ;;  %v743_v54 = vadd.f32 %v742_v17, %v741_v34 }
 0x1a2   :  { %v744_v37 = vsel %vm716_vm0, %v714_v63, 0.0  ;;  %v746_v59 = vsel %vm716_vm0, %v715_v6, 0.0  ;;  %v825_v19 = vadd.f32 %v824_v10, %v823_v31 }
 0x1a3   :  { %v745_v7 = vadd.f32 %v744_v37, %v743_v54 }
 0x1a4   :  { %v826_v48 = vrot.slane %v825_v19, 2 }
 0x1a5   :  { %v747_v2 = vadd.f32 %v746_v59, %v745_v7 }
 0x1a6   :  { %v827_v25 = vadd.f32 %v826_v48, %v825_v19 }
 0x1a7   :  { %748 = vadd.xlane.f32.xlu0 %v747_v2 }
 0x1a8   :  { %v828_v16 = vrot.slane %v827_v25, 1 }
 0x1aa   :  { %v829_v12 = vadd.f32 %v828_v16, %v827_v25 }
 0x230   :  { %v749_v0 = vpop.xlane.xlu0 %748 }
 0x231   :  { %v750_v40 = vrot.slane %v749_v0, 4 }
 0x233   :  { %v751_v49 = vadd.f32 %v750_v40, %v749_v0 }
 0x235   :  { %v752_v1 = vrot.slane %v751_v49, 2 }
 0x237   :  { %v753_v5 = vadd.f32 %v752_v1, %v751_v49 }
 0x239   :  { %v754_v23 = vrot.slane %v753_v5, 1 }
 0x23b   :  { %v755_v42 = vadd.f32 %v754_v23, %v753_v5 }
 0x23d   :  { %902 = vpush %v755_v42 }
 0x23e   :  { %904 = vpush %v829_v12 }
 0x26e   :  { %s903_s2 = spop %902 }
 0x26f   :  { %758 = sst [smem:[#allocation2]] %s903_s2  ;;  %s905_s6 = spop %904 }
 0x270   :  { %832 = sst [smem:[#allocation2 + $0x1]] %s905_s6 }
 0x271   :  { %840 = dma.smem_to_hbm %s1019_s7, 16, %s1756_s3, [#allocation3]  }
 0x272   :  { %1015 = dma.done.wait [#allocation3], 16  }
 0x273   :  { %1016 = vsyncadd [#allocation3], 4294967280 }
 0x274   :  { %844 = sfence }
 0x275   :  { %845 = vsyncpa [#allocation3], 1 }

</bundles_post_ra>
